<compile_context>
chip_gen: v6e
topology: v6e:2x2x1
jax: 0.10.0
libtpu: 0.0.40
codegen_flags: <defaults>
</compile_context>

<pallas_src>
import jax
import jax.numpy as jnp
from jax.experimental import pallas as pl
from jax.experimental.pallas import tpu as pltpu

EPS = 1e-5
SLOPE = 0.2  # LeakyReLU negative slope used by the module


def _round_up(x, m):
    return (x + m - 1) // m * m


# ----------------------------------------------------------------------------
# Pallas kernels
# ----------------------------------------------------------------------------
def _matmul_bias_lrelu_kernel(x_ref, w_ref, b_ref, o_ref):
    """Single full-K conv matmul: o = lrelu(x @ w + b).  bf16 in/out, f32 math."""
    y = jnp.dot(x_ref[...], w_ref[...], preferred_element_type=jnp.float32)
    y = y + b_ref[...]
    y = jnp.where(y >= 0, y, SLOPE * y)
    o_ref[...] = y.astype(o_ref.dtype)


def pallas_conv_matmul_lrelu(x, w, b, tm_max=512):
    """lrelu(x @ w + b)   x:[M,K] bf16  w:[K,N] bf16  b:[N] f32  -> bf16 [M,N].

    Full-K single step; M tiled on a "parallel" grid axis (both v7x TCs)."""
    M, K = x.shape
    K2, N = w.shape
    assert K == K2
    tm = min(tm_max, _round_up(M, 16))      # bf16 native sublane tile is (16,128)
    Mp = _round_up(M, tm)
    if Mp != M:
        x = jnp.pad(x, ((0, Mp - M), (0, 0)))
    out = pl.pallas_call(
        _matmul_bias_lrelu_kernel,
        out_shape=jax.ShapeDtypeStruct((Mp, N), jnp.bfloat16),
        grid=(Mp // tm,),
        in_specs=[
            pl.BlockSpec((tm, K), lambda i: (i, 0)),
            pl.BlockSpec((K, N), lambda i: (0, 0)),
            pl.BlockSpec((1, N), lambda i: (0, 0)),
        ],
        out_specs=pl.BlockSpec((tm, N), lambda i: (i, 0)),
        compiler_params=pltpu.CompilerParams(
            dimension_semantics=("parallel",)),
    )(x, w, b.reshape(1, N).astype(jnp.float32))
    return out[:M] if Mp != M else out


def _matmul_bn_lrelu_kernel(x_ref, w_ref, g_ref, bt_ref, o_ref):
    """Conv-as-matmul with training-mode BatchNorm2d (biased var, one-pass
    sum/sumsq stats) + LeakyReLU(0.2) fused into the epilogue.

    The conv bias is dropped: a per-channel constant added before BN cancels
    exactly in the mean subtraction.  The out block spans the full M
    (= N*H*W rows) so per-channel batch stats are computed in-kernel; the grid
    tiles the (independent) output channels."""
    y = jnp.dot(x_ref[...], w_ref[...], preferred_element_type=jnp.float32)
    mean = jnp.mean(y, axis=0, keepdims=True)
    var = jnp.mean(y * y, axis=0, keepdims=True) - mean * mean
    y = (y - mean) * (g_ref[...] * jax.lax.rsqrt(var + EPS)) + bt_ref[...]
    o_ref[...] = jnp.where(y >= 0, y, SLOPE * y).astype(o_ref.dtype)


def pallas_conv_matmul_bn_lrelu(x, w, gamma, beta, tn_max=128):
    """lrelu(BN(x @ w))   x:[M,K] bf16  w:[K,N] bf16  -> bf16 [M,N].

    M is NOT tiled (batch statistics need all rows); the grid tiles N into
    128-lane blocks marked "parallel" (per-channel stats are independent)."""
    M, K = x.shape
    K2, N = w.shape
    assert K == K2
    tn = min(tn_max, N)
    assert N % tn == 0
    # TODO(synk): at larger images/batches (big M) switch to an M-tiled
    # two-pass BN (per-tile sum/sumsq accumulators + a small normalize pass);
    # the full-M-resident design below is sized for small GAN patch inputs.
    blk_bytes = 2 * (M * K * 2 + K * tn * 2 + M * tn * 2)   # dbl-buffered bf16
    assert blk_bytes < 24 * 1024 * 1024, (
        "BN-fused conv block too large for VMEM; tile M", blk_bytes)
    return pl.pallas_call(
        _matmul_bn_lrelu_kernel,
        out_shape=jax.ShapeDtypeStruct((M, N), jnp.bfloat16),
        grid=(N // tn,),
        in_specs=[
            pl.BlockSpec((M, K), lambda j: (0, 0)),
            pl.BlockSpec((K, tn), lambda j: (0, j)),
            pl.BlockSpec((1, tn), lambda j: (0, j)),
            pl.BlockSpec((1, tn), lambda j: (0, j)),
        ],
        out_specs=pl.BlockSpec((M, tn), lambda j: (0, j)),
        compiler_params=pltpu.CompilerParams(
            dimension_semantics=("parallel",)),
    )(x, w, gamma.reshape(1, N).astype(jnp.float32),
      beta.reshape(1, N).astype(jnp.float32))


def _patch_head_sigmoid_kernel(x_ref, w_ref, b_ref, o_ref):
    """Final 1-channel conv as a VPU multiply + cross-lane reduce (N_out=1
    would waste the MXU and need a 2 MiB zero-padded weight), fused with its
    bias and the final sigmoid of the patch channel.  bf16 inputs, f32 math."""
    prod = x_ref[...].astype(jnp.float32) * w_ref[...].astype(jnp.float32)
    patch = jnp.sum(prod, axis=1, keepdims=True) + b_ref[...]
    o_ref[...] = jax.nn.sigmoid(patch)


def _cond_mlp_kernel(cam_ref, ts_ref,
                     wc1, bc1, wc2, bc2,
                     wt1, bt1, wt2, bt2,
                     wfc_c, wfc_t, bfc, o_ref):
    """camera_mlp + timestamp_mlp + fc (+ final sigmoid of the condition
    channels), all fused into one launch.  cat([cam, ts]) @ Wfc is computed as
    cam @ Wfc[:E] + ts @ Wfc[E:] to avoid an in-kernel concat."""
    f32 = jnp.float32
    cam = jnp.dot(cam_ref[...], wc1[...], preferred_element_type=f32) + bc1[...]
    cam = jnp.maximum(cam, 0.0)
    cam = jnp.dot(cam, wc2[...], preferred_element_type=f32) + bc2[...]

    ts = jnp.dot(ts_ref[...], wt1[...], preferred_element_type=f32) + bt1[...]
    ts = jnp.maximum(ts, 0.0)
    ts = jnp.dot(ts, wt2[...], preferred_element_type=f32) + bt2[...]

    y = (jnp.dot(cam, wfc_c[...], preferred_element_type=f32)
         + jnp.dot(ts, wfc_t[...], preferred_element_type=f32) + bfc[...])
    y = jnp.where(y >= 0, y, SLOPE * y)
    o_ref[...] = jax.nn.sigmoid(y)


# ----------------------------------------------------------------------------
# Conv glue: im2col (padding / strided slicing is plain JAX)
# ----------------------------------------------------------------------------
# TODO(synk): fuse im2col into the matmul kernels (kh*kw as extra reduction
# grid axes reading shifted windows of the padded NHWC slab) to avoid the
# kh*kw-fold patch duplication in HBM at larger image sizes.
def im2col_nhwc(x, ksize, stride, pad):
    N, H, W, C = x.shape
    Ho = (H + 2 * pad - ksize) // stride + 1
    Wo = (W + 2 * pad - ksize) // stride + 1
    xp = jnp.pad(x, ((0, 0), (pad, pad), (pad, pad), (0, 0)))
    cols = []
    for i in range(ksize):
        for j in range(ksize):
            cols.append(xp[:, i:i + stride * Ho:stride,
                           j:j + stride * Wo:stride, :])
    # [N,Ho,Wo,C,kh*kw] -> flatten to (c*kh*kw + i*kw + j), matching OIHW flatten
    patches = jnp.stack(cols, axis=-1).reshape(N * Ho * Wo, C * ksize * ksize)
    return patches, Ho, Wo


def conv2d_lrelu_lane_dense(x_nhwc, w_oihw, b, stride):
    """conv1: lane-dense 128-wide kernel output (N=64 padded with zero output
    channels in the weight); the padding is sliced off afterwards."""
    O, I, kh, kw = w_oihw.shape
    patches, Ho, Wo = im2col_nhwc(x_nhwc, kh, stride, 1)
    w2d = w_oihw.reshape(O, I * kh * kw).T.astype(jnp.bfloat16)   # [K, O]
    b = b.astype(jnp.float32)
    Np = _round_up(O, 128)
    if Np != O:
        w2d = jnp.pad(w2d, ((0, 0), (0, Np - O)))
        b = jnp.pad(b, (0, Np - O))
    y = pallas_conv_matmul_lrelu(patches, w2d, b)
    return y.reshape(x_nhwc.shape[0], Ho, Wo, Np)[..., :O]


def conv2d_bn_lrelu(x_nhwc, w_oihw, gamma, beta, stride):
    O, I, kh, kw = w_oihw.shape
    patches, Ho, Wo = im2col_nhwc(x_nhwc, kh, stride, 1)
    w2d = w_oihw.reshape(O, I * kh * kw).T.astype(jnp.bfloat16)
    y = pallas_conv_matmul_bn_lrelu(patches, w2d, gamma, beta)
    return y.reshape(x_nhwc.shape[0], Ho, Wo, O)


def patch_head_sigmoid(x_nhwc, w_oihw, b):
    O, I, kh, kw = w_oihw.shape  # O == 1
    patches, Ho, Wo = im2col_nhwc(x_nhwc, kh, 1, 1)          # [M, I*kh*kw] bf16
    w_row = w_oihw.reshape(1, I * kh * kw).astype(jnp.bfloat16)
    out = pl.pallas_call(
        _patch_head_sigmoid_kernel,
        out_shape=jax.ShapeDtypeStruct((patches.shape[0], 1), jnp.float32),
    )(patches, w_row, b.reshape(1, 1).astype(jnp.float32))
    return out.reshape(x_nhwc.shape[0], Ho, Wo, 1)


def cond_mlp_sigmoid(params, camera_center, timestamp):
    # Kept f32: tiny layer (2 rows), keeps exact parity of the 512 condition
    # channels with the reference.
    f32 = jnp.float32
    E = params["cam2_w"].shape[0]          # embed_dim
    wfc = params["fc_w"].T                 # [2E, 512]
    Nb = camera_center.shape[0]
    return pl.pallas_call(
        _cond_mlp_kernel,
        out_shape=jax.ShapeDtypeStruct((Nb, params["fc_b"].shape[0]), f32),
    )(camera_center.astype(f32), timestamp.astype(f32),
      params["cam1_w"].T.astype(f32), params["cam1_b"].reshape(1, -1).astype(f32),
      params["cam2_w"].T.astype(f32), params["cam2_b"].reshape(1, -1).astype(f32),
      params["ts1_w"].T.astype(f32), params["ts1_b"].reshape(1, -1).astype(f32),
      params["ts2_w"].T.astype(f32), params["ts2_b"].reshape(1, -1).astype(f32),
      wfc[:E].astype(f32), wfc[E:].astype(f32),
      params["fc_b"].reshape(1, -1).astype(f32))


# ----------------------------------------------------------------------------
# Deterministic parameter init (shapes match Discriminator.__init__)
# ----------------------------------------------------------------------------
def init_params(key, embed_dim=128):
    keys = jax.random.split(key, 40)
    ki = iter(keys)

    def conv_w(o, i):  # _weights_init: normal(0, 0.02) for Conv
        return 0.02 * jax.random.normal(next(ki), (o, i, 4, 4), jnp.float32)

    def conv_b(o):     # torch default conv bias (small uniform); small normal here
        return 0.01 * jax.random.normal(next(ki), (o,), jnp.float32)

    def bn_g(c):       # _weights_init: normal(1, 0.02), bias 0
        return 1.0 + 0.02 * jax.random.normal(next(ki), (c,), jnp.float32)

    def lin(o, i):
        w = jax.random.normal(next(ki), (o, i), jnp.float32) / jnp.sqrt(float(i))
        b = 0.01 * jax.random.normal(next(ki), (o,), jnp.float32)
        return w, b

    p = {}
    p["c1_w"], p["c1_b"] = conv_w(64, 3), conv_b(64)
    p["c2_w"], p["c2_b"] = conv_w(128, 64), conv_b(128)
    p["bn2_g"], p["bn2_b"] = bn_g(128), jnp.zeros((128,), jnp.float32)
    p["c3_w"], p["c3_b"] = conv_w(256, 128), conv_b(256)
    p["bn3_g"], p["bn3_b"] = bn_g(256), jnp.zeros((256,), jnp.float32)
    p["c4_w"], p["c4_b"] = conv_w(512, 256), conv_b(512)
    p["bn4_g"], p["bn4_b"] = bn_g(512), jnp.zeros((512,), jnp.float32)
    p["c5_w"], p["c5_b"] = conv_w(1, 512), conv_b(1)
    p["cam1_w"], p["cam1_b"] = lin(embed_dim, 3)
    p["cam2_w"], p["cam2_b"] = lin(embed_dim, embed_dim)
    p["ts1_w"], p["ts1_b"] = lin(embed_dim, 1)
    p["ts2_w"], p["ts2_b"] = lin(embed_dim, embed_dim)
    p["fc_w"], p["fc_b"] = lin(512, 2 * embed_dim)
    return p


# ----------------------------------------------------------------------------
# Forward pass (Pallas)
# ----------------------------------------------------------------------------
def discriminator_forward(params, img_nchw, camera_center, timestamp):
    # NCHW -> NHWC bf16 slab (conv kernels take and emit bf16, f32 accumulate)
    x = jnp.transpose(img_nchw, (0, 2, 3, 1)).astype(jnp.bfloat16)

    # image_model: conv1 (+lrelu), then conv+BN+lrelu fused kernels.
    # Conv bias before BatchNorm cancels in the mean -> dropped from the
    # BN-fused kernels (mathematical no-op).
    x = conv2d_lrelu_lane_dense(x, params["c1_w"], params["c1_b"], 2)
    for idx in (2, 3, 4):
        x = conv2d_bn_lrelu(x, params[f"c{idx}_w"],
                            params[f"bn{idx}_g"], params[f"bn{idx}_b"], 2)

    # c5 conv + bias + sigmoid fused (patch channel of the output)
    patch_sig = patch_head_sigmoid(x, params["c5_w"], params["c5_b"])  # [N,Hp,Wp,1]

    # camera_mlp / timestamp_mlp / fc / sigmoid fused (condition channels)
    cond_sig = cond_mlp_sigmoid(params, camera_center, timestamp)      # [N,512]

    # broadcast condition over spatial dims, concat on channel (pure data move)
    N, Hp, Wp, _ = patch_sig.shape
    cond_b = jnp.broadcast_to(cond_sig[:, None, None, :],
                              (N, Hp, Wp, cond_sig.shape[-1]))
    out = jnp.concatenate([patch_sig, cond_b], axis=-1)                # [N,Hp,Wp,513]
    return jnp.transpose(out, (0, 3, 1, 2))                            # back to NCHW


# ----------------------------------------------------------------------------
# Pure-JAX reference (NCHW, lax.conv) for a sanity check
# ----------------------------------------------------------------------------
def reference_forward(params, img, cam_c, ts_in):
    hp = jax.lax.Precision.HIGHEST

    def conv(x, w, b, stride):
        y = jax.lax.conv_general_dilated(
            x, w, (stride, stride), [(1, 1), (1, 1)],
            dimension_numbers=("NCHW", "OIHW", "NCHW"), precision=hp)
        return y + b[None, :, None, None]

    def lrelu(x):
        return jnp.where(x >= 0, x, SLOPE * x)

    def bn(x, g, bt):
        m = x.mean((0, 2, 3), keepdims=True)
        v = ((x - m) ** 2).mean((0, 2, 3), keepdims=True)
        return (g[None, :, None, None] * (x - m) * jax.lax.rsqrt(v + EPS)
                + bt[None, :, None, None])

    x = lrelu(conv(img, params["c1_w"], params["c1_b"], 2))
    x = lrelu(bn(conv(x, params["c2_w"], params["c2_b"], 2), params["bn2_g"], params["bn2_b"]))
    x = lrelu(bn(conv(x, params["c3_w"], params["c3_b"], 2), params["bn3_g"], params["bn3_b"]))
    x = lrelu(bn(conv(x, params["c4_w"], params["c4_b"], 2), params["bn4_g"], params["bn4_b"]))
    patch = conv(x, params["c5_w"], params["c5_b"], 1)

    cam = jnp.maximum(jnp.dot(cam_c, params["cam1_w"].T, precision=hp) + params["cam1_b"], 0.0)
    cam = jnp.dot(cam, params["cam2_w"].T, precision=hp) + params["cam2_b"]
    ts = jnp.maximum(jnp.dot(ts_in, params["ts1_w"].T, precision=hp) + params["ts1_b"], 0.0)
    ts = jnp.dot(ts, params["ts2_w"].T, precision=hp) + params["ts2_b"]
    cond = lrelu(jnp.dot(jnp.concatenate([cam, ts], 1), params["fc_w"].T, precision=hp)
                 + params["fc_b"])
    cond = jnp.broadcast_to(cond[:, :, None, None],
                            (cond.shape[0], cond.shape[1], patch.shape[2], patch.shape[3]))
    return jax.nn.sigmoid(jnp.concatenate([patch, cond], axis=1))


if __name__ == "__main__":
    key = jax.random.PRNGKey(0)
    k_img, k_cam, k_ts, k_par = jax.random.split(key, 4)

    # small, module-consistent shapes: RGB 64x64 images, batch 2
    img = jax.random.normal(k_img, (2, 3, 64, 64), jnp.float32)
    camera_center = jax.random.normal(k_cam, (2, 3), jnp.float32)
    timestamp = jax.random.uniform(k_ts, (2, 1), jnp.float32)

    params = init_params(k_par, embed_dim=128)

    out = discriminator_forward(params, img, camera_center, timestamp)
    out = jax.block_until_ready(out)

    ref = jax.block_until_ready(reference_forward(params, img, camera_center, timestamp))

    assert out.shape == (2, 513, 3, 3), out.shape
    assert bool(jnp.all(jnp.isfinite(out)))
    # bf16 operands + bf16 activation writeback in the conv tower (f32
    # accumulate / f32 BN stats) -> loosened tolerance on the patch channel.
    assert bool(jnp.allclose(out, ref, atol=5e-2, rtol=5e-2)), (
        float(jnp.max(jnp.abs(out - ref))))

    print("KERNEL_OK")
</pallas_src>

<mosaic_0001>
module attributes {stable_mosaic.version = 11 : i64} {
  func.func @_matmul_bias_lrelu_kernel(%arg0: i32, %arg1: memref<512x48xbf16, #tpu.memory_space<vmem>>, %arg2: memref<48x128xbf16, #tpu.memory_space<vmem>>, %arg3: memref<1x128xf32, #tpu.memory_space<vmem>>, %arg4: memref<512x128xbf16, #tpu.memory_space<vmem>>) attributes {dimension_semantics = [#tpu.dimension_semantics<parallel>], iteration_bounds = array<i64: 4>, scalar_prefetch = 0 : i64, scratch_operands = 0 : i64, tpu.core_type = #tpu.core_type<tc>, window_params = [{transform_indices = @transform_0, window_bounds = array<i64: 512, 48>}, {pipeline_mode = #tpu.pipeline_mode<synchronous>, transform_indices = @transform_1, window_bounds = array<i64: 48, 128>}, {pipeline_mode = #tpu.pipeline_mode<synchronous>, transform_indices = @transform_2, window_bounds = array<i64: 1, 128>}, {transform_indices = @transform_3, window_bounds = array<i64: 512, 128>}]} {
    %c0 = arith.constant 0 : index
    %c0_0 = arith.constant 0 : index
    %0 = vector.load %arg1[%c0, %c0_0] : memref<512x48xbf16, #tpu.memory_space<vmem>>, vector<512x48xbf16>
    %c0_1 = arith.constant 0 : index
    %c0_2 = arith.constant 0 : index
    %1 = vector.load %arg2[%c0_1, %c0_2] : memref<48x128xbf16, #tpu.memory_space<vmem>>, vector<48x128xbf16>
    %cst = arith.constant dense<0.000000e+00> : vector<512x128xf32>
    %2 = tpu.matmul %0, %1, %cst {dimension_numbers = #tpu.dot_dimension_numbers<[1], [0], [0], [1], [0, 0, 1, 1], [], []>} : vector<512x48xbf16>, vector<48x128xbf16>, vector<512x128xf32> -> vector<512x128xf32>
    %c0_3 = arith.constant 0 : index
    %c0_4 = arith.constant 0 : index
    %3 = vector.load %arg3[%c0_3, %c0_4] : memref<1x128xf32, #tpu.memory_space<vmem>>, vector<1x128xf32>
    %4 = vector.broadcast %3 : vector<1x128xf32> to vector<512x128xf32>
    %5 = arith.addf %2, %4 : vector<512x128xf32>
    %cst_5 = arith.constant 0.000000e+00 : f32
    %6 = vector.broadcast %cst_5 : f32 to vector<512x128xf32>
    %7 = arith.cmpf oge, %5, %6 : vector<512x128xf32>
    %cst_6 = arith.constant 2.000000e-01 : f32
    %8 = vector.broadcast %cst_6 : f32 to vector<512x128xf32>
    %9 = arith.mulf %8, %5 : vector<512x128xf32>
    %10 = arith.select %7, %5, %9 : vector<512x128xi1>, vector<512x128xf32>
    %11 = arith.truncf %10 : vector<512x128xf32> to vector<512x128xbf16>
    %c0_7 = arith.constant 0 : index
    %c0_8 = arith.constant 0 : index
    %12 = vector.load %arg4[%c0_7, %c0_8] : memref<512x128xbf16, #tpu.memory_space<vmem>>, vector<512x128xbf16>
    tpu.vector_store %arg4[%c0_7, %c0_8], %11 {strides = array<i32>} : memref<512x128xbf16, #tpu.memory_space<vmem>>, vector<512x128xbf16>,
    return
  }
  func.func @transform_0(%arg0: i32) -> (i32, i32) {
    %c0_i32 = arith.constant 0 : i32
    %c0_i32_0 = arith.constant 0 : i32
    return %arg0, %c0_i32 : i32, i32
  }
  func.func @transform_1(%arg0: i32) -> (i32, i32) {
    %c0_i32 = arith.constant 0 : i32
    %c0_i32_0 = arith.constant 0 : i32
    %c0_i32_1 = arith.constant 0 : i32
    return %c0_i32, %c0_i32_0 : i32, i32
  }
  func.func @transform_2(%arg0: i32) -> (i32, i32) {
    %c0_i32 = arith.constant 0 : i32
    %c0_i32_0 = arith.constant 0 : i32
    %c0_i32_1 = arith.constant 0 : i32
    return %c0_i32, %c0_i32_0 : i32, i32
  }
  func.func @transform_3(%arg0: i32) -> (i32, i32) {
    %c0_i32 = arith.constant 0 : i32
    %c0_i32_0 = arith.constant 0 : i32
    return %arg0, %c0_i32 : i32, i32
  }
}

</mosaic_0001>

<bundles_post_ra>
// kernel: tpu_custom_call.1
= control target key start
LH: loop header
LB: loop body
LE: loop exit
PB: predicated region body
PF: predicated region fallthrough
CT: control target
= control target key end

     0   :  { %8 = vsyncpa [#allocation3], 0  ;;  %s2362_s0 = inlined_call_operand.vmem [shape: bf16[2048,48], index: 0, kind: input, shape index: {}]   ;;  %s2363_s1 = inlined_call_operand.vmem [shape: bf16[48,128], index: 1, kind: input, shape index: {}]   ;;  %s2364_s2 = inlined_call_operand.vmem [shape: f32[1,128], index: 2, kind: input, shape index: {}]   ;;  %s2365_s3 = inlined_call_operand.hbm [shape: bf16[2048,128], index: 3, kind: output, shape index: {}]  }
   0x1   :  { %10 = vsyncpa [#allocation3 + $0x1], 0  ;;  %s2074_s12 = smov 0   ;;  %s2076_s13 = smov 0  }
   0x2   :  { %s2078_s14 = smov 0   ;;  %s2080_s15 = smov 0  }
   0x3 LB: > { %s2095_s16 = sadd.s32 4294967295, %s2049_s15   ;;  %s1402_s17 = sadd.s32 4294967294, %s2049_s15   ;;  %s2049_s15 = sphi %s2080_s15, %s2371_s15   ;;  %s2045_s14 = sphi %s2078_s14, %s2370_s14   ;;  %s2041_s13 = sphi %s2076_s13, %s2369_s13   ;;  %s2037_s12 = sphi %s2074_s12, %s2368_s12  }
   0x4   : > { %s2099_s18 = sadd.s32 1, %s2049_s15   ;;  %s91_s19 = sadd.s32 1, %s2045_s14 }
   0x5   : > { %s88_s20 = ssub.s32 %s2049_s15, %s2099_s18  ;;  %p101_p0 = scmp.ne.s32.totalorder %s2045_s14, %s2041_s13 }
   0x6   : > { %p89_p1 = scmp.eq.s32.totalorder %s88_s20, 0  ;;  %p102_p2 = scmp.eq.s32.totalorder %s2095_s16, 3 }
   0x7   : > { %p107_p3 = scmp.ne.s32.totalorder %s2041_s13, %s2037_s12  ;;  %p108_p4 = scmp.eq.s32.totalorder %s1402_s17, 3 }
   0x8   : > { %s2110_s21 = scalar_select %p89_p1, %s2045_s14, %s91_s19  }
   0x9   : > { %p2112_p5 = por %p102_p2, %p101_p0  ;;  %p2116_p6 = por %p108_p4, %p107_p3 }
   0xa   : > { %p1405_p7 = scmp.ge.s32.totalorder %s2049_s15, 1  ;;  %p141_p8 = scmp.lt.s32.totalorder %s2049_s15, 5 }
   0xc   : > { %p142_p9 = pnand %p1405_p7, %p141_p8 }
   0xd   : > { %s1407_s26 = sshll.u32 (!%p142_p9), %s2095_s16, 6  ;;  %s162_s10 = sand.u32 (!%p142_p9), 1, %s2041_s13  }
   0xe   : > { %145 = sbr.rel (%p142_p9) target bundleno = 315 (0x13b), region = 32  ;;  %p166_p10 = scmp.lt.s32.totalorder (!%p142_p9), %s1407_s26, 255 }
   0xf   : > { %s1406_s11 = sshll.u32 (!%p142_p9), %s162_s10, 8  ;;  %s1610_s19 = sshll.u32 (!%p142_p9), %s2095_s16, 12 }
  0x10   : > { %s2220_s17 = scalar_lea.vmem (!%p142_p9), [#allocation2], %s1406_s11  ;;  %s2322_s16 = scalar_lea.sflag (!%p142_p9), [#allocation3], %s162_s10 }
  0x11   : > { %s1340_s20 = sshll.u32 (!%p142_p9), %s2220_s17, 4  ;;  %s2051_s28 = smov (!%p142_p9), [#allocation2]   ;;  %s2316_s20 = int_to_ptr.vmem [resolvable:$true] %s1340_s20 }
  0x12   : > { %s1989_s27 = scalar_lea.vmem (!%p142_p9), %s2316_s20, 4096  ;;  %s1993_s29 = sshll.u32 (!%p142_p9), %s2051_s28, 4  ;;  %s1994_s29 = int_to_ptr.vmem [resolvable:$false] %s1993_s29 }
  0x13   : > { %v1954_v0 = vld [vmem:[%s2363_s1 + $0x10] sm:$0xff]   ;;  %v1955_v1 = vld [vmem:[%s2363_s1 + $0x8] sm:$0xff]   ;;  %s2373_s26 = smov (!%p166_p10, %s1407_s26), 255  ;;  %v1956_v2 = vld [vmem:[%s2363_s1] sm:$0xff]   ;;  %vm428_vm0 = vcmask 392192   ;;  %p1990_p11 = scmp.ne.s32.totalorder %s2316_s20, %s1989_s27 }
  0x14   : > { %1837 = vmatprep.subr.bf16.mxu0 %v1954_v0  ;;  %1907 = vmatprep.subr.bf16.mxu1 %v1954_v0  ;;  %s1408_s4 = sshll.u32 %s2373_s26, 2  ;;  %v2204_v35 = vld [vmem:[%s2364_s2] ss:$0 sm:$0xff]  ;;  %s2314_s26 = scalar_lea.hbm %s2365_s3, %s1610_s19 }
  0x15   : > { %1838 = vmatpush3.bf16.msra.mxu0 %v1954_v0  ;;  %1910 = vmatpush3.bf16.msra.mxu1 %v1954_v0  ;;  %s2135_s7 = scalar_lea.vmem %s2362_s0, %s1408_s4  ;;  %p1991_p12 = pnand %p1990_p11, %p2112_p5 }
  0x16   : > { %1839 = vmatprep.subr.bf16.mxu0 %v1955_v1  ;;  %1908 = vmatprep.subr.bf16.mxu1 %v1955_v1  ;;  %v1957_v3 = vld [vmem:[%s2135_s7] sm:$0xff]   ;;  %v1959_v5 = vld [vmem:[%s2135_s7 + $0x8] sm:$0xff]   ;;  %v1961_v7 = vld [vmem:[%s2135_s7 + $0x10] sm:$0xff]   ;;  %s1995_s30 = scalar_lea.vmem %s1994_s29, 8192  ;;  %p1996_p0 = scmp.lt.s32.totalorder %s2316_s20, %s1994_s29 }
  0x17   : > { %v1958_v4 = vld [vmem:[%s2135_s7 + $0x80] sm:$0xff]   ;;  %1843 = vmatprep.mubr.msk.bf16.mxu0 %vm428_vm0, %v1957_v3  ;;  %v1960_v6 = vld [vmem:[%s2135_s7 + $0x88] sm:$0xff]   ;;  %v1962_v8 = vld [vmem:[%s2135_s7 + $0x90] sm:$0xff]   ;;  %p1992_p13 = pneg %p1991_p12  ;;  %p1997_p1 = scmp.lt.s32.totalorder %s1995_s30, %s1989_s27 }
  0x18   : > { %1875 = vmatprep.mubr.msk.bf16.mxu1 %vm428_vm0, %v1958_v4  ;;  %v1963_v9 = vld [vmem:[%s2135_s7 + $0x18] sm:$0xff]   ;;  %v1965_v11 = vld [vmem:[%s2135_s7 + $0x20] sm:$0xff]   ;;  %v1967_v13 = vld [vmem:[%s2135_s7 + $0x28] sm:$0xff]  }
  0x19   : > { %1840 = vmatpush3.bf16.msra.mxu0 %v1955_v1  ;;  %1911 = vmatpush3.bf16.msra.mxu1 %v1955_v1  ;;  %v1964_v10 = vld [vmem:[%s2135_s7 + $0x98] sm:$0xff]   ;;  %v1966_v12 = vld [vmem:[%s2135_s7 + $0xa0] sm:$0xff]   ;;  %v1968_v14 = vld [vmem:[%s2135_s7 + $0xa8] sm:$0xff]   ;;  %p1998_p2 = por %p1997_p1, %p1996_p0 }
  0x1a   : > { %1841 = vmatprep.subr.bf16.mxu0 %v1956_v2  ;;  %1909 = vmatprep.subr.bf16.mxu1 %v1956_v2  ;;  %v1969_v15 = vld [vmem:[%s2135_s7 + $0x30] sm:$0xff]   ;;  %v1971_v17 = vld [vmem:[%s2135_s7 + $0x38] sm:$0xff]   ;;  %v1973_v19 = vld [vmem:[%s2135_s7 + $0x40] sm:$0xff]  }
  0x1b   : > { %v1970_v16 = vld [vmem:[%s2135_s7 + $0xb0] sm:$0xff]   ;;  %v1972_v18 = vld [vmem:[%s2135_s7 + $0xb8] sm:$0xff]   ;;  %v1974_v20 = vld [vmem:[%s2135_s7 + $0xc0] sm:$0xff]   ;;  %p1999_p3 = pnand %p1998_p2, %p1992_p13 }
  0x1c   : > { %v1975_v21 = vld [vmem:[%s2135_s7 + $0x48] sm:$0xff]   ;;  %v1977_v23 = vld [vmem:[%s2135_s7 + $0x50] sm:$0xff]   ;;  %v1979_v25 = vld [vmem:[%s2135_s7 + $0x58] sm:$0xff]  }
  0x1d   : > { %1842 = vmatpush3.bf16.msra.mxu0 %v1956_v2  ;;  %1912 = vmatpush3.bf16.msra.mxu1 %v1956_v2  ;;  %v1976_v22 = vld [vmem:[%s2135_s7 + $0xc8] sm:$0xff]   ;;  %v1978_v24 = vld [vmem:[%s2135_s7 + $0xd0] sm:$0xff]   ;;  %v1980_v26 = vld [vmem:[%s2135_s7 + $0xd8] sm:$0xff]  }
  0x1e   : > { %v1981_v27 = vld [vmem:[%s2135_s7 + $0x60] sm:$0xff]   ;;  %v1983_v29 = vld [vmem:[%s2135_s7 + $0x68] sm:$0xff]   ;;  %v1985_v31 = vld [vmem:[%s2135_s7 + $0x70] sm:$0xff]  }
  0x1f   : > { %v1982_v28 = vld [vmem:[%s2135_s7 + $0xe0] sm:$0xff]   ;;  %v1984_v30 = vld [vmem:[%s2135_s7 + $0xe8] sm:$0xff]   ;;  %v1986_v32 = vld [vmem:[%s2135_s7 + $0xf0] sm:$0xff]  }
  0x20   : > { %1844 = vmatmul.mubr.msk.bf16.vlgmr.msra.gmra.mxu0 %vm428_vm0, %v1959_v5  ;;  %1876 = vmatmul.mubr.msk.bf16.vlgmr.msra.gmra.mxu1 %vm428_vm0, %v1960_v6  ;;  %v1987_v33 = vld [vmem:[%s2135_s7 + $0x78] sm:$0xff]  }
  0x21   : > { %1847 = vmatprep.mubr.msk.bf16.mxu0 %vm428_vm0, %v1961_v7  ;;  %1879 = vmatprep.mubr.msk.bf16.mxu1 %vm428_vm0, %v1962_v8  ;;  %v1988_v34 = vld [vmem:[%s2135_s7 + $0xf8] sm:$0xff]  }
  0x28   : > { %1848 = vmatmul.mubr.msk.bf16.gmra.mxu0 %vm428_vm0, %v1963_v9  ;;  %1880 = vmatmul.mubr.msk.bf16.gmra.mxu1 %vm428_vm0, %v1964_v10 }
  0x29   : > { %1851 = vmatprep.mubr.msk.bf16.mxu0 %vm428_vm0, %v1965_v11  ;;  %1883 = vmatprep.mubr.msk.bf16.mxu1 %vm428_vm0, %v1966_v12 }
  0x30   : > { %1852 = vmatmul.mubr.msk.bf16.gmra.mxu0 %vm428_vm0, %v1967_v13  ;;  %1884 = vmatmul.mubr.msk.bf16.gmra.mxu1 %vm428_vm0, %v1968_v14 }
  0x31   : > { %1855 = vmatprep.mubr.msk.bf16.mxu0 %vm428_vm0, %v1969_v15  ;;  %1887 = vmatprep.mubr.msk.bf16.mxu1 %vm428_vm0, %v1970_v16 }
  0x38   : > { %1856 = vmatmul.mubr.msk.bf16.gmra.mxu0 %vm428_vm0, %v1971_v17  ;;  %1888 = vmatmul.mubr.msk.bf16.gmra.mxu1 %vm428_vm0, %v1972_v18 }
  0x39   : > { %1859 = vmatprep.mubr.msk.bf16.mxu0 %vm428_vm0, %v1973_v19  ;;  %1891 = vmatprep.mubr.msk.bf16.mxu1 %vm428_vm0, %v1974_v20 }
  0x40   : > { %1860 = vmatmul.mubr.msk.bf16.gmra.mxu0 %vm428_vm0, %v1975_v21  ;;  %1892 = vmatmul.mubr.msk.bf16.gmra.mxu1 %vm428_vm0, %v1976_v22 }
  0x41   : > { %1863 = vmatprep.mubr.msk.bf16.mxu0 %vm428_vm0, %v1977_v23  ;;  %1895 = vmatprep.mubr.msk.bf16.mxu1 %vm428_vm0, %v1978_v24 }
  0x48   : > { %1864 = vmatmul.mubr.msk.bf16.gmra.mxu0 %vm428_vm0, %v1979_v25  ;;  %1896 = vmatmul.mubr.msk.bf16.gmra.mxu1 %vm428_vm0, %v1980_v26 }
  0x49   : > { %1867 = vmatprep.mubr.msk.bf16.mxu0 %vm428_vm0, %v1981_v27  ;;  %1899 = vmatprep.mubr.msk.bf16.mxu1 %vm428_vm0, %v1982_v28 }
  0x50   : > { %1868 = vmatmul.mubr.msk.bf16.gmra.mxu0 %vm428_vm0, %v1983_v29  ;;  %1900 = vmatmul.mubr.msk.bf16.gmra.mxu1 %vm428_vm0, %v1984_v30 }
  0x51   : > { %1871 = vmatprep.mubr.msk.bf16.mxu0 %vm428_vm0, %v1985_v31  ;;  %1903 = vmatprep.mubr.msk.bf16.mxu1 %vm428_vm0, %v1986_v32 }
  0x58   : > { %1872 = vmatmul.mubr.msk.bf16.gmra.mxu0 %vm428_vm0, %v1987_v33  ;;  %1904 = vmatmul.mubr.msk.bf16.gmra.mxu1 %vm428_vm0, %v1988_v34 }
  0xe0   : > { %v1845_v36 = vpop.f32.mrf.mxu0  ;;  %v1877_v37 = vpop.f32.mrf.mxu1 }
  0xe1   : > { %v568_v38 = vadd.f32 %v1845_v36, %v2204_v35  ;;  %v696_v39 = vadd.f32 %v1877_v37, %v2204_v35 }
  0xe2   : > { %v559_v40 = vpop.f32.mrf.mxu0  ;;  %v687_v41 = vpop.f32.mrf.mxu1 }
  0xe3   : > { %vm816_vm1 = vcmp.ge.f32.partialorder %v568_v38, 0.0  ;;  %v880_v42 = vmul.f32 0.2, %v568_v38  ;;  %vm848_vm2 = vcmp.ge.f32.partialorder %v696_v39, 0.0  ;;  %v912_v43 = vmul.f32 0.2, %v696_v39 }
  0xe4   : > { %v560_v44 = vadd.f32 %v2204_v35, %v559_v40  ;;  %v688_v45 = vadd.f32 %v2204_v35, %v687_v41  ;;  %v1846_v46 = vpop.f32.mrf.mxu0  ;;  %v1878_v47 = vpop.f32.mrf.mxu1 }
  0xe5   : > { %v944_v48 = vsel %vm816_vm1, %v568_v38, %v880_v42  ;;  %v571_v49 = vadd.f32 %v1846_v46, %v2204_v35  ;;  %v699_v50 = vadd.f32 %v1878_v47, %v2204_v35  ;;  %v976_v51 = vsel %vm848_vm2, %v696_v39, %v912_v43 }
  0xe6   : > { %vm814_vm3 = vcmp.ge.f32.partialorder %v560_v44, 0.0  ;;  %v878_v52 = vmul.f32 0.2, %v560_v44  ;;  %vm846_vm4 = vcmp.ge.f32.partialorder %v688_v45, 0.0  ;;  %v562_v53 = vpop.f32.mrf.mxu0  ;;  %v690_v54 = vpop.f32.mrf.mxu1  ;;  %v910_v58 = vmul.f32 0.2, %v688_v45 }
  0xe7   : > { %vm817_vm5 = vcmp.ge.f32.partialorder %v571_v49, 0.0  ;;  %v881_v55 = vmul.f32 0.2, %v571_v49  ;;  %vm849_vm6 = vcmp.ge.f32.partialorder %v699_v50, 0.0  ;;  %v913_v56 = vmul.f32 0.2, %v699_v50 }
  0xe8   : > { %v942_v57 = vsel %vm814_vm3, %v560_v44, %v878_v52  ;;  %v563_v59 = vadd.f32 %v2204_v35, %v562_v53  ;;  %v691_v60 = vadd.f32 %v2204_v35, %v690_v54  ;;  %v1849_v61 = vpop.f32.mrf.mxu0  ;;  %v1881_v62 = vpop.f32.mrf.mxu1  ;;  %v974_v10 = vsel %vm846_vm4, %v688_v45, %v910_v58 }
  0xe9   : > { %v945_v63 = vsel %vm817_vm5, %v571_v49, %v881_v55  ;;  %v977_v0 = vsel %vm849_vm6, %v699_v50, %v913_v56  ;;  %v584_v1 = vadd.f32 %v1849_v61, %v2204_v35  ;;  %v712_v2 = vadd.f32 %v1881_v62, %v2204_v35 }
  0xea   : > { %v1619_v3 = vpack.c.bf16 %v945_v63, %v944_v48  ;;  %v1699_v4 = vpack.c.bf16 %v977_v0, %v976_v51  ;;  %vm815_vm7 = vcmp.ge.f32.partialorder %v563_v59, 0.0  ;;  %v879_v5 = vmul.f32 0.2, %v563_v59  ;;  %v575_v6 = vpop.f32.mrf.mxu0  ;;  %v703_v7 = vpop.f32.mrf.mxu1 }
  0xeb   : > { %vm847_vm8 = vcmp.ge.f32.partialorder %v691_v60, 0.0  ;;  %v911_v8 = vmul.f32 0.2, %v691_v60  ;;  %vm820_vm9 = vcmp.ge.f32.partialorder %v584_v1, 0.0  ;;  %v884_v9 = vmul.f32 0.2, %v584_v1 }
  0xec   : > { %1771 = vst [vmem:[%s2220_s17 + $0x8] sm:$0xff] %v1619_v3   ;;  %1787 = vst [vmem:[%s2220_s17 + $0x88] sm:$0xff] %v1699_v4   ;;  %v943_v11 = vsel %vm815_vm7, %v563_v59, %v879_v5  ;;  %v916_v12 = vmul.f32 0.2, %v712_v2  ;;  %v576_v13 = vadd.f32 %v2204_v35, %v575_v6  ;;  %v1850_v14 = vpop.f32.mrf.mxu0  ;;  %v1882_v15 = vpop.f32.mrf.mxu1  ;;  %vm852_vm10 = vcmp.ge.f32.partialorder %v712_v2, 0.0 }
  0xed   : > { %v1614_v16 = vpack.c.bf16 %v943_v11, %v942_v57  ;;  %v975_v17 = vsel %vm847_vm8, %v691_v60, %v911_v8  ;;  %v704_v18 = vadd.f32 %v2204_v35, %v703_v7  ;;  %v948_v20 = vsel %vm820_vm9, %v584_v1, %v884_v9 }
  0xee   : > { %v1694_v19 = vpack.c.bf16 %v975_v17, %v974_v10  ;;  %vm818_vm11 = vcmp.ge.f32.partialorder %v576_v13, 0.0  ;;  %v882_v21 = vmul.f32 0.2, %v576_v13  ;;  %v578_v22 = vpop.f32.mrf.mxu0  ;;  %v706_v23 = vpop.f32.mrf.mxu1  ;;  %v587_v25 = vadd.f32 %v1850_v14, %v2204_v35 }
  0xef   : > { %1615 = vst [vmem:[%s2220_s17] sm:$0xff] %v1614_v16   ;;  %vm850_vm12 = vcmp.ge.f32.partialorder %v704_v18, 0.0  ;;  %v914_v24 = vmul.f32 0.2, %v704_v18  ;;  %v715_v26 = vadd.f32 %v1882_v15, %v2204_v35  ;;  %v980_v27 = vsel %vm852_vm10, %v712_v2, %v916_v12 }
  0xf0   : > { %1786 = vst [vmem:[%s2220_s17 + $0x80] sm:$0xff] %v1694_v19   ;;  %v946_v28 = vsel %vm818_vm11, %v576_v13, %v882_v21  ;;  %v579_v29 = vadd.f32 %v2204_v35, %v578_v22  ;;  %v707_v30 = vadd.f32 %v2204_v35, %v706_v23  ;;  %v1853_v31 = vpop.f32.mrf.mxu0  ;;  %v1885_v32 = vpop.f32.mrf.mxu1  ;;  %vm821_vm13 = vcmp.ge.f32.partialorder %v587_v25, 0.0 }
  0xf1   : > { %v978_v33 = vsel %vm850_vm12, %v704_v18, %v914_v24  ;;  %v885_v34 = vmul.f32 0.2, %v587_v25  ;;  %vm853_vm14 = vcmp.ge.f32.partialorder %v715_v26, 0.0  ;;  %v917_v36 = vmul.f32 0.2, %v715_v26 }
  0xf2   : > { %vm819_vm15 = vcmp.ge.f32.partialorder %v579_v29, 0.0  ;;  %v883_v37 = vmul.f32 0.2, %v579_v29  ;;  %vm851_vm0 = vcmp.ge.f32.partialorder %v707_v30, 0.0  ;;  %v591_v38 = vpop.f32.mrf.mxu0  ;;  %v719_v39 = vpop.f32.mrf.mxu1  ;;  %v915_v41 = vmul.f32 0.2, %v707_v30 }
  0xf3   : > { %v949_v40 = vsel %vm821_vm13, %v587_v25, %v885_v34  ;;  %v600_v42 = vadd.f32 %v1853_v31, %v2204_v35  ;;  %v728_v43 = vadd.f32 %v1885_v32, %v2204_v35  ;;  %v981_v45 = vsel %vm853_vm14, %v715_v26, %v917_v36 }
  0xf4   : > { %v1629_v44 = vpack.c.bf16 %v949_v40, %v948_v20  ;;  %v947_v46 = vsel %vm819_vm15, %v579_v29, %v883_v37  ;;  %v592_v47 = vadd.f32 %v2204_v35, %v591_v38  ;;  %v1854_v48 = vpop.f32.mrf.mxu0  ;;  %v1886_v49 = vpop.f32.mrf.mxu1  ;;  %v1709_v50 = vpack.c.bf16 %v981_v45, %v980_v27 }
  0xf5   : > { %v1624_v51 = vpack.c.bf16 %v947_v46, %v946_v28  ;;  %v979_v52 = vsel %vm851_vm0, %v707_v30, %v915_v41  ;;  %vm824_vm1 = vcmp.ge.f32.partialorder %v600_v42, 0.0  ;;  %v888_v54 = vmul.f32 0.2, %v600_v42 }
  0xf6   : > { %1773 = vst [vmem:[%s2220_s17 + $0x18] sm:$0xff] %v1629_v44   ;;  %v1704_v53 = vpack.c.bf16 %v979_v52, %v978_v33  ;;  %vm856_vm2 = vcmp.ge.f32.partialorder %v728_v43, 0.0  ;;  %v920_v55 = vmul.f32 0.2, %v728_v43  ;;  %v594_v56 = vpop.f32.mrf.mxu0  ;;  %v722_v57 = vpop.f32.mrf.mxu1  ;;  %1789 = vst [vmem:[%s2220_s17 + $0x98] sm:$0xff] %v1709_v50   ;;  %vm822_vm3 = vcmp.ge.f32.partialorder %v592_v47, 0.0 }
  0xf7   : > { %1772 = vst [vmem:[%s2220_s17 + $0x10] sm:$0xff] %v1624_v51   ;;  %v886_v58 = vmul.f32 0.2, %v592_v47  ;;  %v720_v59 = vadd.f32 %v2204_v35, %v719_v39  ;;  %v603_v60 = vadd.f32 %v1854_v48, %v2204_v35  ;;  %v952_v61 = vsel %vm824_vm1, %v600_v42, %v888_v54 }
  0xf8   : > { %1788 = vst [vmem:[%s2220_s17 + $0x90] sm:$0xff] %v1704_v53   ;;  %v984_v62 = vsel %vm856_vm2, %v728_v43, %v920_v55  ;;  %v731_v63 = vadd.f32 %v1886_v49, %v2204_v35  ;;  %v595_v0 = vadd.f32 %v2204_v35, %v594_v56  ;;  %v1857_v1 = vpop.f32.mrf.mxu0  ;;  %v1889_v2 = vpop.f32.mrf.mxu1  ;;  %v723_v11 = vadd.f32 %v2204_v35, %v722_v57 }
  0xf9   : > { %v950_v3 = vsel %vm822_vm3, %v592_v47, %v886_v58  ;;  %vm854_vm4 = vcmp.ge.f32.partialorder %v720_v59, 0.0  ;;  %v918_v4 = vmul.f32 0.2, %v720_v59  ;;  %vm825_vm5 = vcmp.ge.f32.partialorder %v603_v60, 0.0 }
  0xfa   : > { %v889_v5 = vmul.f32 0.2, %v603_v60  ;;  %vm857_vm6 = vcmp.ge.f32.partialorder %v731_v63, 0.0  ;;  %v921_v6 = vmul.f32 0.2, %v731_v63  ;;  %vm823_vm7 = vcmp.ge.f32.partialorder %v595_v0, 0.0  ;;  %v607_v7 = vpop.f32.mrf.mxu0  ;;  %v735_v8 = vpop.f32.mrf.mxu1 }
  0xfb   : > { %v982_v9 = vsel %vm854_vm4, %v720_v59, %v918_v4  ;;  %v887_v10 = vmul.f32 0.2, %v595_v0  ;;  %v616_v12 = vadd.f32 %v1857_v1, %v2204_v35  ;;  %v744_v15 = vadd.f32 %v1889_v2, %v2204_v35 }
  0xfc   : > { %v953_v13 = vsel %vm825_vm5, %v603_v60, %v889_v5  ;;  %v985_v14 = vsel %vm857_vm6, %v731_v63, %v921_v6  ;;  %v608_v16 = vadd.f32 %v2204_v35, %v607_v7  ;;  %v1858_v17 = vpop.f32.mrf.mxu0  ;;  %v1890_v18 = vpop.f32.mrf.mxu1  ;;  %vm855_vm8 = vcmp.ge.f32.partialorder %v723_v11, 0.0 }
  0xfd   : > { %v1639_v19 = vpack.c.bf16 %v953_v13, %v952_v61  ;;  %v1719_v20 = vpack.c.bf16 %v985_v14, %v984_v62  ;;  %v951_v21 = vsel %vm823_vm7, %v595_v0, %v887_v10  ;;  %v919_v23 = vmul.f32 0.2, %v723_v11 }
  0xfe   : > { %v1634_v22 = vpack.c.bf16 %v951_v21, %v950_v3  ;;  %vm828_vm9 = vcmp.ge.f32.partialorder %v616_v12, 0.0  ;;  %v892_v24 = vmul.f32 0.2, %v616_v12  ;;  %v610_v25 = vpop.f32.mrf.mxu0  ;;  %v738_v26 = vpop.f32.mrf.mxu1  ;;  %vm860_vm10 = vcmp.ge.f32.partialorder %v744_v15, 0.0 }
  0xff   : > { %1775 = vst [vmem:[%s2220_s17 + $0x28] sm:$0xff] %v1639_v19   ;;  %1791 = vst [vmem:[%s2220_s17 + $0xa8] sm:$0xff] %v1719_v20   ;;  %v924_v27 = vmul.f32 0.2, %v744_v15  ;;  %vm826_vm11 = vcmp.ge.f32.partialorder %v608_v16, 0.0  ;;  %v983_v29 = vsel %vm855_vm8, %v723_v11, %v919_v23  ;;  %v736_v31 = vadd.f32 %v2204_v35, %v735_v8 }
 0x100   : > { %v890_v28 = vmul.f32 0.2, %v608_v16  ;;  %1774 = vst [vmem:[%s2220_s17 + $0x20] sm:$0xff] %v1634_v22   ;;  %v956_v30 = vsel %vm828_vm9, %v616_v12, %v892_v24  ;;  %v619_v32 = vadd.f32 %v1858_v17, %v2204_v35  ;;  %v1861_v33 = vpop.f32.mrf.mxu0  ;;  %v1893_v34 = vpop.f32.mrf.mxu1  ;;  %v1714_v36 = vpack.c.bf16 %v983_v29, %v982_v9 }
 0x101   : > { %v988_v37 = vsel %vm860_vm10, %v744_v15, %v924_v27  ;;  %v747_v39 = vadd.f32 %v1890_v18, %v2204_v35  ;;  %vm858_vm12 = vcmp.ge.f32.partialorder %v736_v31, 0.0  ;;  %v922_v40 = vmul.f32 0.2, %v736_v31 }
 0x102   : > { %v954_v38 = vsel %vm826_vm11, %v608_v16, %v890_v28  ;;  %vm829_vm13 = vcmp.ge.f32.partialorder %v619_v32, 0.0  ;;  %v893_v41 = vmul.f32 0.2, %v619_v32  ;;  %v623_v42 = vpop.f32.mrf.mxu0  ;;  %v751_v43 = vpop.f32.mrf.mxu1  ;;  %1790 = vst [vmem:[%s2220_s17 + $0xa0] sm:$0xff] %v1714_v36   ;;  %v611_v45 = vadd.f32 %v2204_v35, %v610_v25 }
 0x103   : > { %vm861_vm14 = vcmp.ge.f32.partialorder %v747_v39, 0.0  ;;  %v925_v44 = vmul.f32 0.2, %v747_v39  ;;  %v739_v46 = vadd.f32 %v2204_v35, %v738_v26  ;;  %v986_v47 = vsel %vm858_vm12, %v736_v31, %v922_v40 }
 0x104   : > { %v957_v48 = vsel %vm829_vm13, %v619_v32, %v893_v41  ;;  %v632_v49 = vadd.f32 %v1861_v33, %v2204_v35  ;;  %v760_v50 = vadd.f32 %v1893_v34, %v2204_v35  ;;  %v1862_v51 = vpop.f32.mrf.mxu0  ;;  %v1894_v52 = vpop.f32.mrf.mxu1  ;;  %vm827_vm15 = vcmp.ge.f32.partialorder %v611_v45, 0.0 }
 0x105   : > { %v1649_v53 = vpack.c.bf16 %v957_v48, %v956_v30  ;;  %v989_v54 = vsel %vm861_vm14, %v747_v39, %v925_v44  ;;  %v891_v55 = vmul.f32 0.2, %v611_v45  ;;  %vm859_vm0 = vcmp.ge.f32.partialorder %v739_v46, 0.0 }
 0x106   : > { %v1729_v56 = vpack.c.bf16 %v989_v54, %v988_v37  ;;  %v923_v57 = vmul.f32 0.2, %v739_v46  ;;  %vm832_vm1 = vcmp.ge.f32.partialorder %v632_v49, 0.0  ;;  %v626_v58 = vpop.f32.mrf.mxu0  ;;  %v754_v59 = vpop.f32.mrf.mxu1  ;;  %v896_v61 = vmul.f32 0.2, %v632_v49 }
 0x107   : > { %1777 = vst [vmem:[%s2220_s17 + $0x38] sm:$0xff] %v1649_v53   ;;  %v955_v60 = vsel %vm827_vm15, %v611_v45, %v891_v55  ;;  %vm864_vm2 = vcmp.ge.f32.partialorder %v760_v50, 0.0  ;;  %v928_v62 = vmul.f32 0.2, %v760_v50  ;;  %v624_v1 = vadd.f32 %v2204_v35, %v623_v42 }
 0x108   : > { %1793 = vst [vmem:[%s2220_s17 + $0xb8] sm:$0xff] %v1729_v56   ;;  %v1644_v63 = vpack.c.bf16 %v955_v60, %v954_v38  ;;  %v987_v0 = vsel %vm859_vm0, %v739_v46, %v923_v57  ;;  %v752_v2 = vadd.f32 %v2204_v35, %v751_v43  ;;  %v1865_v3 = vpop.f32.mrf.mxu0  ;;  %v1897_v4 = vpop.f32.mrf.mxu1  ;;  %v960_v6 = vsel %vm832_vm1, %v632_v49, %v896_v61 }
 0x109   : > { %v1724_v5 = vpack.c.bf16 %v987_v0, %v986_v47  ;;  %v992_v7 = vsel %vm864_vm2, %v760_v50, %v928_v62  ;;  %v635_v8 = vadd.f32 %v1862_v51, %v2204_v35  ;;  %vm830_vm3 = vcmp.ge.f32.partialorder %v624_v1, 0.0 }
 0x10a   : > { %1776 = vst [vmem:[%s2220_s17 + $0x30] sm:$0xff] %v1644_v63   ;;  %v894_v9 = vmul.f32 0.2, %v624_v1  ;;  %vm862_vm4 = vcmp.ge.f32.partialorder %v752_v2, 0.0  ;;  %v926_v10 = vmul.f32 0.2, %v752_v2  ;;  %v639_v11 = vpop.f32.mrf.mxu0  ;;  %v767_v12 = vpop.f32.mrf.mxu1  ;;  %v763_v14 = vadd.f32 %v1894_v52, %v2204_v35 }
 0x10b   : > { %1792 = vst [vmem:[%s2220_s17 + $0xb0] sm:$0xff] %v1724_v5   ;;  %vm833_vm5 = vcmp.ge.f32.partialorder %v635_v8, 0.0  ;;  %v897_v13 = vmul.f32 0.2, %v635_v8  ;;  %v627_v15 = vadd.f32 %v2204_v35, %v626_v58  ;;  %v755_v18 = vadd.f32 %v2204_v35, %v754_v59 }
 0x10c   : > { %v958_v16 = vsel %vm830_vm3, %v624_v1, %v894_v9  ;;  %v990_v17 = vsel %vm862_vm4, %v752_v2, %v926_v10  ;;  %v648_v19 = vadd.f32 %v1865_v3, %v2204_v35  ;;  %v1866_v20 = vpop.f32.mrf.mxu0  ;;  %v1898_v21 = vpop.f32.mrf.mxu1  ;;  %vm865_vm6 = vcmp.ge.f32.partialorder %v763_v14, 0.0 }
 0x10d   : > { %v961_v22 = vsel %vm833_vm5, %v635_v8, %v897_v13  ;;  %v929_v23 = vmul.f32 0.2, %v763_v14  ;;  %vm831_vm7 = vcmp.ge.f32.partialorder %v627_v15, 0.0  ;;  %v895_v25 = vmul.f32 0.2, %v627_v15 }
 0x10e   : > { %v1659_v24 = vpack.c.bf16 %v961_v22, %v960_v6  ;;  %vm863_vm8 = vcmp.ge.f32.partialorder %v755_v18, 0.0  ;;  %v927_v26 = vmul.f32 0.2, %v755_v18  ;;  %v642_v27 = vpop.f32.mrf.mxu0  ;;  %v770_v28 = vpop.f32.mrf.mxu1  ;;  %vm836_vm9 = vcmp.ge.f32.partialorder %v648_v19, 0.0 }
 0x10f   : > { %v993_v29 = vsel %vm865_vm6, %v763_v14, %v929_v23  ;;  %v900_v30 = vmul.f32 0.2, %v648_v19  ;;  %v776_v31 = vadd.f32 %v1897_v4, %v2204_v35  ;;  %v959_v33 = vsel %vm831_vm7, %v627_v15, %v895_v25 }
 0x110   : > { %1779 = vst [vmem:[%s2220_s17 + $0x48] sm:$0xff] %v1659_v24   ;;  %v1739_v32 = vpack.c.bf16 %v993_v29, %v992_v7  ;;  %v991_v34 = vsel %vm863_vm8, %v755_v18, %v927_v26  ;;  %v640_v36 = vadd.f32 %v2204_v35, %v639_v11  ;;  %v1869_v37 = vpop.f32.mrf.mxu0  ;;  %v1901_v38 = vpop.f32.mrf.mxu1  ;;  %v1654_v39 = vpack.c.bf16 %v959_v33, %v958_v16 }
 0x111   : > { %v1734_v40 = vpack.c.bf16 %v991_v34, %v990_v17  ;;  %v964_v41 = vsel %vm836_vm9, %v648_v19, %v900_v30  ;;  %vm868_vm10 = vcmp.ge.f32.partialorder %v776_v31, 0.0  ;;  %v932_v42 = vmul.f32 0.2, %v776_v31 }
 0x112   : > { %1795 = vst [vmem:[%s2220_s17 + $0xc8] sm:$0xff] %v1739_v32   ;;  %vm834_vm11 = vcmp.ge.f32.partialorder %v640_v36, 0.0  ;;  %v898_v43 = vmul.f32 0.2, %v640_v36  ;;  %v768_v44 = vadd.f32 %v2204_v35, %v767_v12  ;;  %v655_v45 = vpop.f32.mrf.mxu0  ;;  %v783_v46 = vpop.f32.mrf.mxu1  ;;  %1778 = vst [vmem:[%s2220_s17 + $0x40] sm:$0xff] %v1654_v39   ;;  %v651_v47 = vadd.f32 %v1866_v20, %v2204_v35 }
 0x113   : > { %1794 = vst [vmem:[%s2220_s17 + $0xc0] sm:$0xff] %v1734_v40   ;;  %v779_v48 = vadd.f32 %v1898_v21, %v2204_v35  ;;  %v643_v49 = vadd.f32 %v2204_v35, %v642_v27  ;;  %v771_v50 = vadd.f32 %v2204_v35, %v770_v28  ;;  %v996_v51 = vsel %vm868_vm10, %v776_v31, %v932_v42 }
 0x114   : > { %v962_v52 = vsel %vm834_vm11, %v640_v36, %v898_v43  ;;  %vm866_vm12 = vcmp.ge.f32.partialorder %v768_v44, 0.0  ;;  %v930_v53 = vmul.f32 0.2, %v768_v44  ;;  %v1870_v54 = vpop.f32.mrf.mxu0  ;;  %v1902_v55 = vpop.f32.mrf.mxu1  ;;  %vm837_vm13 = vcmp.ge.f32.partialorder %v651_v47, 0.0 }
 0x115   : > { %v901_v56 = vmul.f32 0.2, %v651_v47  ;;  %vm869_vm14 = vcmp.ge.f32.partialorder %v779_v48, 0.0  ;;  %v933_v57 = vmul.f32 0.2, %v779_v48  ;;  %vm835_vm15 = vcmp.ge.f32.partialorder %v643_v49, 0.0 }
 0x116   : > { %v994_v58 = vsel %vm866_vm12, %v768_v44, %v930_v53  ;;  %v899_v59 = vmul.f32 0.2, %v643_v49  ;;  %vm867_vm0 = vcmp.ge.f32.partialorder %v771_v50, 0.0  ;;  %v658_v60 = vpop.f32.mrf.mxu0  ;;  %v786_v61 = vpop.f32.mrf.mxu1  ;;  %v931_v0 = vmul.f32 0.2, %v771_v50 }
 0x117   : > { %v965_v62 = vsel %vm837_vm13, %v651_v47, %v901_v56  ;;  %v997_v63 = vsel %vm869_vm14, %v779_v48, %v933_v57  ;;  %v664_v1 = vadd.f32 %v1869_v37, %v2204_v35  ;;  %v792_v5 = vadd.f32 %v1901_v38, %v2204_v35 }
 0x118   : > { %v1669_v2 = vpack.c.bf16 %v965_v62, %v964_v41  ;;  %v1749_v3 = vpack.c.bf16 %v997_v63, %v996_v51  ;;  %v963_v4 = vsel %vm835_vm15, %v643_v49, %v899_v59  ;;  %v1873_v6 = vpop.f32.mrf.mxu0  ;;  %v1905_v7 = vpop.f32.mrf.mxu1  ;;  %v995_v9 = vsel %vm867_vm0, %v771_v50, %v931_v0 }
 0x119   : > { %v1664_v8 = vpack.c.bf16 %v963_v4, %v962_v52  ;;  %vm840_vm1 = vcmp.ge.f32.partialorder %v664_v1, 0.0  ;;  %v904_v10 = vmul.f32 0.2, %v664_v1  ;;  %v1744_v11 = vpack.c.bf16 %v995_v9, %v994_v58 }
 0x11a   : > { %1781 = vst [vmem:[%s2220_s17 + $0x58] sm:$0xff] %v1669_v2   ;;  %1797 = vst [vmem:[%s2220_s17 + $0xd8] sm:$0xff] %v1749_v3   ;;  %vm872_vm2 = vcmp.ge.f32.partialorder %v792_v5, 0.0  ;;  %v936_v12 = vmul.f32 0.2, %v792_v5  ;;  %v656_v13 = vadd.f32 %v2204_v35, %v655_v45  ;;  %v784_v14 = vadd.f32 %v2204_v35, %v783_v46  ;;  %v671_v20 = vpop.f32.mrf.mxu0  ;;  %v799_v21 = vpop.f32.mrf.mxu1 }
 0x11b   : > { %1780 = vst [vmem:[%s2220_s17 + $0x50] sm:$0xff] %v1664_v8   ;;  %v667_v15 = vadd.f32 %v1870_v54, %v2204_v35  ;;  %v795_v16 = vadd.f32 %v1902_v55, %v2204_v35  ;;  %1796 = vst [vmem:[%s2220_s17 + $0xd0] sm:$0xff] %v1744_v11   ;;  %v968_v17 = vsel %vm840_vm1, %v664_v1, %v904_v10 }
 0x11c   : > { %vm838_vm3 = vcmp.ge.f32.partialorder %v656_v13, 0.0  ;;  %v902_v18 = vmul.f32 0.2, %v656_v13  ;;  %v659_v19 = vadd.f32 %v2204_v35, %v658_v60  ;;  %v1000_v22 = vsel %vm872_vm2, %v792_v5, %v936_v12  ;;  %v1874_v34 = vpop.f32.mrf.mxu0  ;;  %v1906_v36 = vpop.f32.mrf.mxu1 }
 0x11d   : > { %vm870_vm4 = vcmp.ge.f32.partialorder %v784_v14, 0.0  ;;  %vm841_vm5 = vcmp.ge.f32.partialorder %v667_v15, 0.0  ;;  %v905_v23 = vmul.f32 0.2, %v667_v15  ;;  %v934_v24 = vmul.f32 0.2, %v784_v14 }
 0x11e   : > { %vm873_vm6 = vcmp.ge.f32.partialorder %v795_v16, 0.0  ;;  %v937_v25 = vmul.f32 0.2, %v795_v16  ;;  %vm839_vm7 = vcmp.ge.f32.partialorder %v659_v19, 0.0  ;;  %v966_v26 = vsel %vm838_vm3, %v656_v13, %v902_v18  ;;  %v674_v50 = vpop.f32.mrf.mxu0  ;;  %v802_v51 = vpop.f32.mrf.mxu1 }
 0x11f   : > { %v969_v27 = vsel %vm841_vm5, %v667_v15, %v905_v23  ;;  %v903_v28 = vmul.f32 0.2, %v659_v19  ;;  %v787_v29 = vadd.f32 %v2204_v35, %v786_v61  ;;  %v680_v32 = vadd.f32 %v1873_v6, %v2204_v35 }
 0x120   : > { %v1679_v30 = vpack.c.bf16 %v969_v27, %v968_v17  ;;  %v1001_v31 = vsel %vm873_vm6, %v795_v16, %v937_v25  ;;  %v808_v33 = vadd.f32 %v1905_v7, %v2204_v35  ;;  %v998_v40 = vsel %vm870_vm4, %v784_v14, %v934_v24 }
 0x121   : > { %v1759_v37 = vpack.c.bf16 %v1001_v31, %v1000_v22  ;;  %v967_v38 = vsel %vm839_vm7, %v659_v19, %v903_v28  ;;  %vm871_vm8 = vcmp.ge.f32.partialorder %v787_v29, 0.0  ;;  %v935_v39 = vmul.f32 0.2, %v787_v29 }
 0x122   : > { %1783 = vst [vmem:[%s2220_s17 + $0x68] sm:$0xff] %v1679_v30   ;;  %v1674_v41 = vpack.c.bf16 %v967_v38, %v966_v26  ;;  %vm844_vm9 = vcmp.ge.f32.partialorder %v680_v32, 0.0  ;;  %v908_v42 = vmul.f32 0.2, %v680_v32  ;;  %vm876_vm10 = vcmp.ge.f32.partialorder %v808_v33, 0.0 }
 0x123   : > { %1799 = vst [vmem:[%s2220_s17 + $0xe8] sm:$0xff] %v1759_v37   ;;  %v999_v43 = vsel %vm871_vm8, %v787_v29, %v935_v39  ;;  %v940_v44 = vmul.f32 0.2, %v808_v33  ;;  %v672_v45 = vadd.f32 %v2204_v35, %v671_v20  ;;  %v800_v47 = vadd.f32 %v2204_v35, %v799_v21 }
 0x124   : > { %1782 = vst [vmem:[%s2220_s17 + $0x60] sm:$0xff] %v1674_v41   ;;  %v1754_v46 = vpack.c.bf16 %v999_v43, %v998_v40  ;;  %v683_v48 = vadd.f32 %v1874_v34, %v2204_v35  ;;  %v811_v49 = vadd.f32 %v1906_v36, %v2204_v35  ;;  %v972_v52 = vsel %vm844_vm9, %v680_v32, %v908_v42 }
 0x125   : > { %v1004_v53 = vsel %vm876_vm10, %v808_v33, %v940_v44  ;;  %v906_v55 = vmul.f32 0.2, %v672_v45  ;;  %v675_v57 = vadd.f32 %v2204_v35, %v674_v50  ;;  %v803_v58 = vadd.f32 %v2204_v35, %v802_v51 }
 0x126   : > { %1798 = vst [vmem:[%s2220_s17 + $0xe0] sm:$0xff] %v1754_v46   ;;  %vm845_vm11 = vcmp.ge.f32.partialorder %v683_v48, 0.0  ;;  %v909_v54 = vmul.f32 0.2, %v683_v48  ;;  %vm877_vm12 = vcmp.ge.f32.partialorder %v811_v49, 0.0  ;;  %vm842_vm13 = vcmp.ge.f32.partialorder %v672_v45, 0.0 }
 0x127   : > { %v941_v56 = vmul.f32 0.2, %v811_v49  ;;  %vm874_vm14 = vcmp.ge.f32.partialorder %v800_v47, 0.0  ;;  %v938_v59 = vmul.f32 0.2, %v800_v47  ;;  %vm843_vm15 = vcmp.ge.f32.partialorder %v675_v57, 0.0 }
 0x128   : > { %v973_v60 = vsel %vm845_vm11, %v683_v48, %v909_v54  ;;  %v907_v63 = vmul.f32 0.2, %v675_v57  ;;  %vm875_vm0 = vcmp.ge.f32.partialorder %v803_v58, 0.0  ;;  %v939_v1 = vmul.f32 0.2, %v803_v58 }
 0x129   : > { %v1689_v61 = vpack.c.bf16 %v973_v60, %v972_v52  ;;  %v1005_v62 = vsel %vm877_vm12, %v811_v49, %v941_v56  ;;  %v970_v2 = vsel %vm842_vm13, %v672_v45, %v906_v55  ;;  %v1002_v3 = vsel %vm874_vm14, %v800_v47, %v938_v59 }
 0x12a   : > { %v1769_v0 = vpack.c.bf16 %v1005_v62, %v1004_v53  ;;  %v971_v35 = vsel %vm843_vm15, %v675_v57, %v907_v63  ;;  %v1003_v5 = vsel %vm875_vm0, %v803_v58, %v939_v1 }
 0x12b   : > { %1785 = vst [vmem:[%s2220_s17 + $0x78] sm:$0xff] %v1689_v61   ;;  %v1684_v4 = vpack.c.bf16 %v971_v35, %v970_v2  ;;  %v1764_v6 = vpack.c.bf16 %v1003_v5, %v1002_v3 }
 0x12c   : > { %1801 = vst [vmem:[%s2220_s17 + $0xf8] sm:$0xff] %v1769_v0  }
 0x12d   : > { %1784 = vst [vmem:[%s2220_s17 + $0x70] sm:$0xff] %v1684_v4   ;;  %1800 = vst [vmem:[%s2220_s17 + $0xf0] sm:$0xff] %v1764_v6  }
 0x12e   : > { %2002 = shalt.err (!%p1999_p3)
}
 0x12f   : > { %s2003_s4 = scalar_lea.hbm %s2314_s26, 4096  ;;  %s2007_s7 = scalar_lea.hbm %s2365_s3, 16384 }
 0x130   : > { %p2004_p4 = scmp.ne.s32.totalorder %s2314_s26, %s2003_s4  ;;  %p2008_p9 = scmp.lt.s32.totalorder %s2314_s26, %s2365_s3 }
 0x131   : > { %p2009_p10 = scmp.lt.s32.totalorder %s2007_s7, %s2003_s4 }
 0x132   : > { %p2005_p7 = pnand %p2004_p4, %p2112_p5 }
 0x133   : > { %p2010_p11 = por %p2009_p10, %p2008_p9 }
 0x134   : > { %p2006_p8 = pneg %p2005_p7 }
 0x136   : > { %p2011_p12 = pnand %p2010_p11, %p2006_p8 }
 0x138   : > { %2014 = shalt.err (!%p2011_p12)
}
 0x139   : > { %s2052_s10 = smov 64   ;;  %s2053_s11 = smov 4  }
 0x13a   : > { %1913 = dma.vmem_to_hbm [thread:$0]  (%p2112_p5), %s2316_s20, 4096, %s2314_s26, %s2322_s16, %s2052_s10, %s2052_s10, %s2053_s11  }
 0x13b PF: > { %p1919_p13 = scmp.ge.s32.totalorder %s2049_s15, 2  ;;  %s1355_s17 = sand.u32 1, %s2037_s12  }
 0x13c   : > { %s1356_s19 = scalar_lea.sflag [#allocation3], %s1355_s17 }
 0x13d   : > { %p1916_p0 = pnand %p1919_p13, %p2116_p6 }
 0x13f   : > { %p1917_p1 = pneg %p1916_p0 }
 0x141   : > { %2032 = dma.done.wait (%p1917_p1), %s1356_s19, 4096  }
 0x142   : > { %2034 = vsyncadd (%p1917_p1), %s1356_s19, 4294963200  ;;  %p13_p2 = scmp.ge.s32.totalorder %s2099_s18, 6   ;;  %s2368_s12 = smov %s2041_s13 }
 0x143   : > { %s2369_s13 = smov %s2045_s14  ;;  %s2370_s14 = smov %s2110_s21 }
 0x144   : > { %s2371_s15 = smov %s2099_s18  ;;  %15 = sbr.rel (!%p13_p2) target bundleno = 3 (0x3), region = 67 }
 0x149   :  { %1361 = vsyncpa [#allocation3], 1 }
 0x14a   :  { %1363 = vsyncpa [#allocation3 + $0x1], 1 }

</bundles_post_ra>
